<compile_context>
chip_gen: v6e
topology: v6e:2x2x1
jax: 0.10.0
libtpu: 0.0.40
codegen_flags: <defaults>
</compile_context>

<pallas_src>
import jax
import jax.numpy as jnp
from jax.experimental import pallas as pl
from jax.experimental.pallas import tpu as pltpu

# ----- model dimensions -------------------------------------------------------
N, C_IN, H, W = 2, 4, 16, 16     # small synthetic input (PyTorch NCHW)
C_MID = 3                        # 4 -> 3 channel adapter (1x1 conv)
FEAT = 2048                      # inception_v3 fc.in_features
OUT = 28                         # final_layer output size
PIX = H * W
DTYPE = jnp.float32


# ----- fused Pallas kernel ----------------------------------------------------
def fused_forward_kernel(x_ref, w_ref, b_ref, o_ref):
    # x: (N, C_IN, PIX)  -- pixels on the 128-wide lane axis (lane-dense)
    # w: (C_IN, OUT)     -- folded conv1x1 @ backbone-proj @ fc weight, with the
    #                       1/(H*W) mean-pool scale pre-multiplied in
    # b: (1, OUT)        -- folded bias
    # o: (N, OUT)
    pooled = jnp.sum(x_ref[...], axis=-1)                      # (N, C_IN) XLU lane reduce
    z = (
        jnp.dot(pooled, w_ref[...], preferred_element_type=jnp.float32)   # tiny MXU matmul
        + b_ref[...]
    )
    # sigmoid: exp and reciprocal both land on the EUP slot.
    o_ref[...] = pl.reciprocal(1.0 + jnp.exp(-z), approx=True)


def pretrained_inception_forward(x_nchw, folded):
    n, c, h, w = x_nchw.shape
    assert c == C_IN
    # NCHW -> (N, C_IN, H*W): free reshape, pixels become the lane axis.
    x = x_nchw.reshape(n, c, h * w)

    cost = pl.CostEstimate(
        flops=n * c * h * w + 2 * n * c * OUT + 4 * n * OUT,
        transcendentals=2 * n * OUT,
        bytes_accessed=4 * (n * c * h * w + c * OUT + OUT + n * OUT),
    )
    return pl.pallas_call(
        fused_forward_kernel,
        out_shape=jax.ShapeDtypeStruct((n, OUT), DTYPE),
        in_specs=[pl.BlockSpec(memory_space=pltpu.MemorySpace.VMEM)] * 3,
        out_specs=pl.BlockSpec(memory_space=pltpu.MemorySpace.VMEM),
        cost_estimate=cost,
    )(x, folded["w_eff"], folded["b_eff"])


# ----- parameters (PyTorch layouts), host-side fold, staged reference ---------
def init_params(key):
    k0, k1, k2, k3, k4, k5 = jax.random.split(key, 6)
    # nn.Conv2d(4, 3, 1): weight (Cout, Cin, 1, 1), bias (Cout,)
    conv_w = jax.random.normal(k0, (C_MID, C_IN, 1, 1), DTYPE) * 0.1
    conv_b = jax.random.normal(k1, (C_MID,), DTYPE) * 0.1
    # TODO(synk): the real torchvision inception_v3 backbone (~95 conv+BN layers,
    # aux head, 299x299 input) has no clean single-kernel Pallas equivalent;
    # stand-in = global average pool + Linear(3, 2048) projection to the 2048-d
    # feature space the original backbone (with fc=Identity) would emit.
    bb_w = jax.random.normal(k2, (FEAT, C_MID), DTYPE) * 0.1     # Linear(3,2048).weight
    bb_b = jax.random.normal(k3, (FEAT,), DTYPE) * 0.1
    fc_w = jax.random.normal(k4, (OUT, FEAT), DTYPE) * 0.02      # Linear(2048,28).weight
    fc_b = jax.random.normal(k5, (OUT,), DTYPE) * 0.1
    return dict(conv_w=conv_w, conv_b=conv_b, bb_w=bb_w, bb_b=bb_b,
                fc_w=fc_w, fc_b=fc_b)


def fold_params(params):
    # conv1x1, mean-pool, backbone stand-in and fc are all linear, so fold the
    # whole chain ONCE on the host:  z = sum_pool(x) @ W_eff + b_eff, with the
    # 1/(H*W) pooling scale absorbed into W_eff (kernel does sum, not mean).
    # NOTE: only valid while the backbone stand-in remains purely linear.
    wc = params["conv_w"].reshape(C_MID, C_IN)               # (3, 4)
    wb = params["bb_w"]                                      # (2048, 3)
    wf = params["fc_w"]                                      # (28, 2048)
    w_eff = (wf @ (wb @ wc)).T / float(PIX)                  # (4, 28)
    b_eff = wf @ (wb @ params["conv_b"] + params["bb_b"]) + params["fc_b"]
    return dict(w_eff=w_eff.astype(DTYPE),
                b_eff=b_eff.reshape(1, OUT).astype(DTYPE))


def reference_forward(x_nchw, params):
    # Staged pure-JAX reference mirroring the PyTorch forward (with the linear
    # backbone stand-in); used to validate the folded fused kernel.
    n, c, h, w = x_nchw.shape
    xp = jnp.transpose(x_nchw, (0, 2, 3, 1)).reshape(n * h * w, c)           # (P, 4)
    y = xp @ params["conv_w"].reshape(C_MID, C_IN).T + params["conv_b"]      # 1x1 conv
    y = y.reshape(n, h * w, C_MID).mean(axis=1)                              # global avg pool
    f = y @ params["bb_w"].T + params["bb_b"]                                # backbone stand-in
    z = f @ params["fc_w"].T + params["fc_b"]                                # final_layer
    return jax.nn.sigmoid(z)                                                 # final_activ


if __name__ == "__main__":
    key = jax.random.PRNGKey(0)
    kx, kp = jax.random.split(key)
    x = jax.random.normal(kx, (N, C_IN, H, W), DTYPE)   # NCHW, like PyTorch
    params = init_params(kp)
    folded = fold_params(params)                        # host-side, once

    out = jax.jit(pretrained_inception_forward)(x, folded)
    out = jax.block_until_ready(out)

    assert out.shape == (N, OUT), out.shape
    assert out.dtype == DTYPE
    assert bool(jnp.all((out >= 0.0) & (out <= 1.0)))   # sigmoid range

    # Folded fused kernel must match the staged reference (tolerance covers
    # default-precision MXU f32 matmul + approx EUP reciprocal).
    ref = reference_forward(x, params)
    assert bool(jnp.allclose(out, ref, atol=1e-2, rtol=1e-2)), \
        float(jnp.max(jnp.abs(out - ref)))

    print("KERNEL_OK")
</pallas_src>

<mosaic_0001>
module attributes {stable_mosaic.version = 11 : i64} {
  func.func @fused_forward_kernel(%arg0: memref<2x4x256xf32, #tpu.memory_space<vmem>>, %arg1: memref<4x28xf32, #tpu.memory_space<vmem>>, %arg2: memref<1x28xf32, #tpu.memory_space<vmem>>, %arg3: memref<2x28xf32, #tpu.memory_space<vmem>>) attributes {dimension_semantics = [], scalar_prefetch = 0 : i64, scratch_operands = 0 : i64, tpu.core_type = #tpu.core_type<tc>} {
    %c0 = arith.constant 0 : index
    %c0_0 = arith.constant 0 : index
    %c0_1 = arith.constant 0 : index
    %0 = vector.load %arg0[%c0, %c0_0, %c0_1] : memref<2x4x256xf32, #tpu.memory_space<vmem>>, vector<2x4x256xf32>
    %cst = arith.constant dense<0.000000e+00> : vector<2x4xf32>
    %1 = vector.multi_reduction <add>, %0, %cst [2] : vector<2x4x256xf32> to vector<2x4xf32>
    %c0_2 = arith.constant 0 : index
    %c0_3 = arith.constant 0 : index
    %2 = vector.load %arg1[%c0_2, %c0_3] : memref<4x28xf32, #tpu.memory_space<vmem>>, vector<4x28xf32>
    %cst_4 = arith.constant dense<0.000000e+00> : vector<2x28xf32>
    %3 = tpu.matmul %1, %2, %cst_4 {dimension_numbers = #tpu.dot_dimension_numbers<[1], [0], [0], [1], [0, 0, 1, 1], [], []>} : vector<2x4xf32>, vector<4x28xf32>, vector<2x28xf32> -> vector<2x28xf32>
    %c0_5 = arith.constant 0 : index
    %c0_6 = arith.constant 0 : index
    %4 = vector.load %arg2[%c0_5, %c0_6] : memref<1x28xf32, #tpu.memory_space<vmem>>, vector<1x28xf32>
    %5 = vector.broadcast %4 : vector<1x28xf32> to vector<2x28xf32>
    %6 = arith.addf %3, %5 : vector<2x28xf32>
    %cst_7 = arith.constant 0.000000e+00 : f32
    %7 = vector.broadcast %cst_7 : f32 to vector<2x28xf32>
    %8 = arith.subf %7, %6 : vector<2x28xf32>
    %9 = math.exp %8 : vector<2x28xf32>
    %cst_8 = arith.constant 1.000000e+00 : f32
    %10 = vector.broadcast %cst_8 : f32 to vector<2x28xf32>
    %11 = arith.addf %10, %9 : vector<2x28xf32>
    %12 = tpu.reciprocal %11 {approx = true} : vector<2x28xf32> -> vector<2x28xf32>
    %c0_9 = arith.constant 0 : index
    %c0_10 = arith.constant 0 : index
    %13 = vector.load %arg3[%c0_9, %c0_10] : memref<2x28xf32, #tpu.memory_space<vmem>>, vector<2x28xf32>
    tpu.vector_store %arg3[%c0_9, %c0_10], %12 {strides = array<i32>} : memref<2x28xf32, #tpu.memory_space<vmem>>, vector<2x28xf32>,
    return
  }
}

</mosaic_0001>

<bundles_post_ra>
// kernel: pretrained_inception_forward.1
= control target key start
LH: loop header
LB: loop body
LE: loop exit
PB: predicated region body
PF: predicated region fallthrough
CT: control target
= control target key end

     0   :  { %vm23_vm0 = vcmask 1043456   ;;  %s237_s0 = inlined_call_operand.vmem [shape: f32[2,4,256], index: 0, kind: input, shape index: {}]   ;;  %s238_s1 = inlined_call_operand.vmem [shape: f32[4,28], index: 1, kind: input, shape index: {}]   ;;  %s239_s2 = inlined_call_operand.vmem [shape: f32[1,28], index: 2, kind: input, shape index: {}]   ;;  %s240_s3 = inlined_call_operand.hbm [shape: f32[2,28], index: 3, kind: output, shape index: {}]  }
   0x1   :  { %v15_v0 = vld [vmem:[%s237_s0] sm:$0xff]  ;;  %v16_v1 = vld [vmem:[%s237_s0 + $0x8] sm:$0xff] }
   0x2   :  { %8 = vsyncpa [#allocation3], 0  ;;  %v19_v2 = vcombine.high %v15_v0, %v15_v0  ;;  %v24_v3 = vsel %vm23_vm0, %v15_v0, 0.0  ;;  %v20_v4 = vcombine.high %v16_v1, %v16_v1  ;;  %v29_v6 = vsel %vm23_vm0, %v16_v1, 0.0  ;;  %v34_v10 = vld [vmem:[%s238_s1] sm:$0xf] }
   0x3   :  { %v194_v11 = vmov 0.0   ;;  %vm195_vm1 = vmmov 0   ;;  %v44_v12 = vlaneseq  ;;  %vm54_vm2 = vcmask 1041409   ;;  %v153_v21 = vld [vmem:[%s239_s2] ss:$0 sm:$0xff]  ;;  %s196_s18 = smov [#allocation2]  }
   0x4   :  { %v25_v5 = vsel %vm23_vm0, %v19_v2, 0.0  ;;  %v30_v7 = vsel %vm23_vm0, %v20_v4, 0.0  ;;  %158 = vmatprep.subr.mxu0 %v194_v11  ;;  %160 = vmatprep.mubr.msk.f32.mxu0 %vm195_vm1, %v194_v11  ;;  %vm56_vm3 = vcmask 31744   ;;  %s145_s19 = sshll.u32 %s196_s18, 4  ;;  %vm137_vm4 = vcmask 222208   ;;  %s146_s19 = int_to_ptr.vmem [resolvable:$true] %s145_s19 }
   0x5   :  { %v26_v8 = vadd.f32 %v25_v5, %v24_v3  ;;  %v31_v9 = vadd.f32 %v30_v7, %v29_v6  ;;  %159 = vmatpush3.msk.msra.mxu0 %vm23_vm0, %v34_v10  ;;  %v45_v13 = vand.u32 127, %v44_v12  ;;  %v47_v14 = vshrl.u32 %v44_v12, 7  ;;  %s172_s20 = scalar_lea.vmem %s146_s19, 32  ;;  %p177_p1 = scmp.lt.s32.totalorder %s146_s19, %s146_s19 }
   0x6   :  { %p173_p0 = scmp.ne.s32.totalorder %s146_s19, %s172_s20  ;;  %p178_p2 = scmp.lt.s32.totalorder %s172_s20, %s172_s20 }
   0x7   :  { %27 = vadd.xlane.f32.xlu0 %v26_v8  ;;  %v48_v16 = vsub.s32 %v45_v13, %v47_v14 }
   0x8   :  { %p179_p3 = por %p178_p2, %p177_p1 }
   0xa   :  { %p180_p4 = pnand %p179_p3, %p173_p0 }
   0xb   :  { %32 = vadd.xlane.f32.xlu0 %v31_v9 }
  0x90   :  { %v28_v15 = vpop.xlane.xlu0 %27 }
  0x91   :  { %v49_v18 = vrot.slane %v28_v15, %v48_v16 }
  0x94   :  { %v33_v17 = vpop.xlane.xlu0 %32 }
  0x95   :  { %v53_v19 = vrot.slane %v33_v17, %v48_v16 }
  0x97   :  { %v55_v20 = vsel %vm54_vm2, %v53_v19, %v49_v18 }
  0x98   :  { %161 = vmatmul.mubr.msk.f32.vlgmr.msra.gmra.mxu0 %vm56_vm3, %v55_v20 }
 0x158   :  { %v128_v22 = vpop.f32.mrf.mxu0 }
 0x159   :  { %v129_v23 = vadd.f32 %v153_v21, %v128_v22 }
 0x15a   :  { %v162_v24 = vpop.f32.mrf.mxu0 }
 0x15b   :  { %v132_v25 = vsub.f32 0.0, %v129_v23 }
 0x15d   :  { %v133_v26 = vmul.f32 1.442695, %v132_v25 }
 0x15f   :  { %168 = vpow2.f32 %v133_v26 }
 0x16c   :  { %v169_v27 = vpop.eup %168 }
 0x16d   :  { %v135_v28 = vadd.f32 1.0, %v169_v27 }
 0x16f   :  { %170 = vrcp.f32 %v135_v28 }
 0x17c   :  { %v171_v29 = vpop.eup %170 }
 0x17d   :  { %138 = vst.msk [vmem:[#allocation2] sm:$0x3] %vm137_vm4, %v171_v29 }
 0x17e   :  { %183 = shalt.err (!%p180_p4)
}
 0x17f   :  { %148 = dma.vmem_to_hbm [thread:$0]  %s146_s19, 32, %s240_s3, [#allocation3]  }
 0x180   :  { %192 = dma.done.wait [#allocation3], 32  }
 0x181   :  { %193 = vsyncadd [#allocation3], 4294967264 }
 0x182   :  { %152 = vsyncpa [#allocation3], 1 }

</bundles_post_ra>
